<compile_context>
chip_gen: v7x
topology: tpu7x:2x2x1
jax: 0.10.0
libtpu: 0.0.40
codegen_flags: <defaults>
</compile_context>

<pallas_src>
import functools

import jax
import jax.numpy as jnp
from jax.experimental import pallas as pl
from jax.experimental.pallas import tpu as pltpu


def addnorm_kernel(x_ref, y_ref, gamma_ref, beta_ref, o_ref, *, eps, feat, feat_padded):
    # z = dropout(y) + x  (dropout is identity at p=0.0 / eval)
    z = x_ref[...].astype(jnp.float32) + y_ref[...].astype(jnp.float32)
    inv_f = jnp.float32(1.0 / feat)
    # Padded feature lanes (if any) hold zeros in both x and y, so sum(z) over all
    # lanes equals the sum over the real feature lanes.
    mean = jnp.sum(z, axis=-1, keepdims=True) * inv_f
    centered = z - mean
    if feat == feat_padded:
        sq = centered * centered
    else:
        lane = jax.lax.broadcasted_iota(jnp.int32, z.shape, dimension=z.ndim - 1)
        cm = jnp.where(lane < feat, centered, 0.0)
        sq = cm * cm
    var = jnp.sum(sq, axis=-1, keepdims=True) * inv_f
    zn = centered * jax.lax.rsqrt(var + eps)
    out = zn * gamma_ref[...].astype(jnp.float32) + beta_ref[...].astype(jnp.float32)
    o_ref[...] = out.astype(o_ref.dtype)


def add_norm(x, y, gamma, beta, *, eps=1e-5,
             vmem_data_budget_bytes=32 * 1024 * 1024,
             vmem_limit_bytes=48 * 1024 * 1024):
    assert x.shape == y.shape
    orig_shape = x.shape
    features = x.shape[-1]
    out_dtype = x.dtype

    x2 = x.reshape(-1, features)
    y2 = y.reshape(-1, features)
    rows = x2.shape[0]

    # Lane-dense last dim: pad features to a multiple of 128 (only if needed).
    feat_p = pl.cdiv(features, 128) * 128

    # Sublane-packing-friendly row alignment: 8 for f32, 16 for bf16, etc.
    itemsize = jnp.dtype(x.dtype).itemsize
    row_align = max(8, 32 // max(1, itemsize))

    # Size the row tile from the VMEM data budget:
    # 3 streams (x, y, out) x 2 pipeline buffers x row_tile x feat_p x itemsize.
    bytes_per_row = feat_p * itemsize
    rows_by_vmem = vmem_data_budget_bytes // (6 * bytes_per_row)
    rows_aligned = pl.cdiv(rows, row_align) * row_align
    row_tile = min(1024, max(row_align, rows_by_vmem), rows_aligned)
    row_tile = max(row_align, (row_tile // row_align) * row_align)

    rows_p = pl.cdiv(rows, row_tile) * row_tile

    # Pad (zeros) only when needed; padded rows/lanes are sliced off afterwards.
    if rows_p != rows or feat_p != features:
        pad = ((0, rows_p - rows), (0, feat_p - features))
        x2 = jnp.pad(x2, pad)
        y2 = jnp.pad(y2, pad)
    gamma2 = jnp.pad(gamma.reshape(1, features), ((0, 0), (0, feat_p - features)))
    beta2 = jnp.pad(beta.reshape(1, features), ((0, 0), (0, feat_p - features)))

    grid = (rows_p // row_tile,)
    kernel = functools.partial(addnorm_kernel, eps=eps, feat=features, feat_padded=feat_p)

    out = pl.pallas_call(
        kernel,
        out_shape=jax.ShapeDtypeStruct((rows_p, feat_p), out_dtype),
        grid_spec=pltpu.PrefetchScalarGridSpec(
            num_scalar_prefetch=0,
            grid=grid,
            in_specs=[
                pl.BlockSpec((row_tile, feat_p), lambda i: (i, 0)),
                pl.BlockSpec((row_tile, feat_p), lambda i: (i, 0)),
                pl.BlockSpec((1, feat_p), lambda i: (0, 0)),
                pl.BlockSpec((1, feat_p), lambda i: (0, 0)),
            ],
            out_specs=pl.BlockSpec((row_tile, feat_p), lambda i: (i, 0)),
        ),
        compiler_params=pltpu.CompilerParams(
            dimension_semantics=("parallel",),
            vmem_limit_bytes=vmem_limit_bytes,
        ),
    )(x2, y2, gamma2, beta2)

    return out[:rows, :features].reshape(orig_shape)


def add_norm_ref(x, y, gamma, beta, eps=1e-5):
    z = y + x
    mean = jnp.mean(z, axis=-1, keepdims=True)
    var = jnp.mean((z - mean) ** 2, axis=-1, keepdims=True)
    return (z - mean) / jnp.sqrt(var + eps) * gamma + beta


if __name__ == "__main__":
    batch, seq, features = 2, 8, 32
    key = jax.random.PRNGKey(0)
    kx, ky = jax.random.split(key)
    x = jax.random.normal(kx, (batch, seq, features), dtype=jnp.float32)
    y = jax.random.normal(ky, (batch, seq, features), dtype=jnp.float32)

    # nn.LayerNorm init: weight=1, bias=0 (deterministic, matches module __init__)
    gamma = jnp.ones((features,), dtype=jnp.float32)
    beta = jnp.zeros((features,), dtype=jnp.float32)

    # TODO(synk): dropout with p > 0 (training mode) not implemented; p=0.0 is identity.
    out = add_norm(x, y, gamma, beta)
    out = jax.block_until_ready(out)

    ref = add_norm_ref(x, y, gamma, beta)
    assert jnp.allclose(out, ref, atol=1e-5, rtol=1e-5), "mismatch vs reference"
    print("KERNEL_OK")
</pallas_src>

<mosaic_0001>
module attributes {stable_mosaic.version = 11 : i64} {
  func.func @addnorm_kernel(%arg0: i32, %arg1: memref<16x128xf32, #tpu.memory_space<vmem>>, %arg2: memref<16x128xf32, #tpu.memory_space<vmem>>, %arg3: memref<1x128xf32, #tpu.memory_space<vmem>>, %arg4: memref<1x128xf32, #tpu.memory_space<vmem>>, %arg5: memref<16x128xf32, #tpu.memory_space<vmem>>) attributes {dimension_semantics = [#tpu.dimension_semantics<parallel>], iteration_bounds = array<i64: 1>, scalar_prefetch = 0 : i64, scratch_operands = 0 : i64, tpu.core_type = #tpu.core_type<tc>, window_params = [{transform_indices = @transform_0, window_bounds = array<i64: 16, 128>}, {transform_indices = @transform_1, window_bounds = array<i64: 16, 128>}, {pipeline_mode = #tpu.pipeline_mode<synchronous>, transform_indices = @transform_2, window_bounds = array<i64: 1, 128>}, {pipeline_mode = #tpu.pipeline_mode<synchronous>, transform_indices = @transform_3, window_bounds = array<i64: 1, 128>}, {transform_indices = @transform_4, window_bounds = array<i64: 16, 128>}]} {
    %c0 = arith.constant 0 : index
    %c0_0 = arith.constant 0 : index
    %0 = vector.load %arg1[%c0, %c0_0] : memref<16x128xf32, #tpu.memory_space<vmem>>, vector<16x128xf32>
    %c0_1 = arith.constant 0 : index
    %c0_2 = arith.constant 0 : index
    %1 = vector.load %arg2[%c0_1, %c0_2] : memref<16x128xf32, #tpu.memory_space<vmem>>, vector<16x128xf32>
    %2 = arith.addf %0, %1 : vector<16x128xf32>
    %cst = arith.constant dense<0.000000e+00> : vector<16xf32>
    %3 = vector.multi_reduction <add>, %2, %cst [1] : vector<16x128xf32> to vector<16xf32>
    %4 = vector.shape_cast %3 : vector<16xf32> to vector<16x1xf32>
    %cst_3 = arith.constant 3.125000e-02 : f32
    %5 = vector.broadcast %cst_3 : f32 to vector<16x1xf32>
    %6 = arith.mulf %4, %5 : vector<16x1xf32>
    %7 = vector.broadcast %6 : vector<16x1xf32> to vector<16x128xf32>
    %8 = arith.subf %2, %7 : vector<16x128xf32>
    %9 = tpu.iota {dimensions = array<i32: 1>} : vector<16x128xi32>
    %c32_i32 = arith.constant 32 : i32
    %10 = vector.broadcast %c32_i32 : i32 to vector<16x128xi32>
    %11 = arith.cmpi slt, %9, %10 : vector<16x128xi32>
    %cst_4 = arith.constant 0.000000e+00 : f32
    %12 = vector.broadcast %cst_4 : f32 to vector<16x128xf32>
    %13 = arith.select %11, %8, %12 : vector<16x128xi1>, vector<16x128xf32>
    %14 = arith.mulf %13, %13 : vector<16x128xf32>
    %cst_5 = arith.constant dense<0.000000e+00> : vector<16xf32>
    %15 = vector.multi_reduction <add>, %14, %cst_5 [1] : vector<16x128xf32> to vector<16xf32>
    %16 = vector.shape_cast %15 : vector<16xf32> to vector<16x1xf32>
    %cst_6 = arith.constant 3.125000e-02 : f32
    %17 = vector.broadcast %cst_6 : f32 to vector<16x1xf32>
    %18 = arith.mulf %16, %17 : vector<16x1xf32>
    %cst_7 = arith.constant 9.99999974E-6 : f32
    %19 = vector.broadcast %cst_7 : f32 to vector<16x1xf32>
    %20 = arith.addf %18, %19 : vector<16x1xf32>
    %21 = math.rsqrt %20 : vector<16x1xf32>
    %22 = vector.broadcast %21 : vector<16x1xf32> to vector<16x128xf32>
    %23 = arith.mulf %8, %22 : vector<16x128xf32>
    %c0_8 = arith.constant 0 : index
    %c0_9 = arith.constant 0 : index
    %24 = vector.load %arg3[%c0_8, %c0_9] : memref<1x128xf32, #tpu.memory_space<vmem>>, vector<1x128xf32>
    %25 = vector.broadcast %24 : vector<1x128xf32> to vector<16x128xf32>
    %26 = arith.mulf %23, %25 : vector<16x128xf32>
    %c0_10 = arith.constant 0 : index
    %c0_11 = arith.constant 0 : index
    %27 = vector.load %arg4[%c0_10, %c0_11] : memref<1x128xf32, #tpu.memory_space<vmem>>, vector<1x128xf32>
    %28 = vector.broadcast %27 : vector<1x128xf32> to vector<16x128xf32>
    %29 = arith.addf %26, %28 : vector<16x128xf32>
    %c0_12 = arith.constant 0 : index
    %c0_13 = arith.constant 0 : index
    %30 = vector.load %arg5[%c0_12, %c0_13] : memref<16x128xf32, #tpu.memory_space<vmem>>, vector<16x128xf32>
    tpu.vector_store %arg5[%c0_12, %c0_13], %29 {strides = array<i32>} : memref<16x128xf32, #tpu.memory_space<vmem>>, vector<16x128xf32>,
    return
  }
  func.func @transform_0(%arg0: i32) -> (i32, i32) {
    %c0_i32 = arith.constant 0 : i32
    %c0_i32_0 = arith.constant 0 : i32
    return %arg0, %c0_i32 : i32, i32
  }
  func.func @transform_1(%arg0: i32) -> (i32, i32) {
    %c0_i32 = arith.constant 0 : i32
    %c0_i32_0 = arith.constant 0 : i32
    return %arg0, %c0_i32 : i32, i32
  }
  func.func @transform_2(%arg0: i32) -> (i32, i32) {
    %c0_i32 = arith.constant 0 : i32
    %c0_i32_0 = arith.constant 0 : i32
    %c0_i32_1 = arith.constant 0 : i32
    return %c0_i32, %c0_i32_0 : i32, i32
  }
  func.func @transform_3(%arg0: i32) -> (i32, i32) {
    %c0_i32 = arith.constant 0 : i32
    %c0_i32_0 = arith.constant 0 : i32
    %c0_i32_1 = arith.constant 0 : i32
    return %c0_i32, %c0_i32_0 : i32, i32
  }
  func.func @transform_4(%arg0: i32) -> (i32, i32) {
    %c0_i32 = arith.constant 0 : i32
    %c0_i32_0 = arith.constant 0 : i32
    return %arg0, %c0_i32 : i32, i32
  }
}

</mosaic_0001>

<bundles_post_ra>
// kernel: tpu_custom_call.1
= control target key start
LH: loop header
LB: loop body
LE: loop exit
PB: predicated region body
PF: predicated region fallthrough
CT: control target
= control target key end

     0   :  { %9 = vsyncpa [#allocation3], 0  ;;  %s281_s0 = inlined_call_operand.hbm [shape: f32[16,128], index: 0, kind: input, shape index: {}]   ;;  %s282_s1 = inlined_call_operand.hbm [shape: f32[16,128], index: 1, kind: input, shape index: {}]   ;;  %s283_s2 = inlined_call_operand.vmem [shape: f32[1,128], index: 2, kind: input, shape index: {}]   ;;  %s284_s3 = inlined_call_operand.vmem [shape: f32[1,128], index: 3, kind: input, shape index: {}]   ;;  %s285_s4 = inlined_call_operand.hbm [shape: f32[16,128], index: 4, kind: output, shape index: {}]  }
   0x1   :  { %10 = vsyncpa [#allocation6], 0 }
   0x2   :  { %11 = vsyncpa [#allocation4], 0  ;;  %s200_s15 = smov [#allocation2]   ;;  %s128_s19 = scalar_lea.hbm %s281_s0, 256 }
   0x3   :  { %s17_s16 = sshll.u32 %s200_s15, 4  ;;  %p129_p0 = scmp.ne.s32.totalorder %s281_s0, %s128_s19  ;;  %s18_s16 = int_to_ptr.vmem [resolvable:$true] %s17_s16 }
   0x4   :  { %p132_p1 = scmp.lt.u32.totalorder %s128_s19, %s281_s0 }
   0x6   :  { %p134_p2 = pnand %p132_p1, %p129_p0 }
   0x8   :  { %137 = shalt.err (!%p134_p2)
}
   0x9   :  { %s138_s24 = scalar_lea.vmem %s18_s16, 256  ;;  %p143_p4 = scmp.lt.s32.totalorder %s18_s16, %s18_s16 }
   0xa   :  { %p139_p3 = scmp.ne.s32.totalorder %s18_s16, %s138_s24  ;;  %p144_p5 = scmp.lt.s32.totalorder %s138_s24, %s138_s24 }
   0xc   :  { %p145_p6 = por %p144_p5, %p143_p4 }
   0xe   :  { %p146_p7 = pnand %p145_p6, %p139_p3 }
  0x10   :  { %149 = shalt.err (!%p146_p7)
}
  0x11   :  { %s201_s25 = smov 128   ;;  %s202_s26 = smov 8  }
  0x12   :  { %23 = dma.hbm_to_vmem [thread:$0]  %s281_s0, 256, %s18_s16, [#allocation3], %s201_s25, %s201_s25, %s202_s26  }
  0x13   :  { %s203_s29 = smov [#allocation5]   ;;  %s150_s7 = scalar_lea.hbm %s282_s1, 256 }
  0x14   :  { %s29_s30 = sshll.u32 %s203_s29, 4  ;;  %p151_p8 = scmp.ne.s32.totalorder %s282_s1, %s150_s7  ;;  %s30_s30 = int_to_ptr.vmem [resolvable:$true] %s29_s30 }
  0x15   :  { %p154_p9 = scmp.lt.u32.totalorder %s150_s7, %s282_s1 }
  0x17   :  { %p156_p10 = pnand %p154_p9, %p151_p8 }
  0x19   :  { %159 = shalt.err (!%p156_p10)
}
  0x1a   :  { %s160_s12 = scalar_lea.vmem %s30_s30, 256  ;;  %p165_p12 = scmp.lt.s32.totalorder %s30_s30, %s30_s30 }
  0x1b   :  { %p161_p11 = scmp.ne.s32.totalorder %s30_s30, %s160_s12  ;;  %p166_p13 = scmp.lt.s32.totalorder %s160_s12, %s160_s12 }
  0x1d   :  { %p167_p0 = por %p166_p13, %p165_p12 }
  0x1f   :  { %p168_p1 = pnand %p167_p0, %p161_p11 }
  0x21   :  { %171 = shalt.err (!%p168_p1)
}
  0x22   :  { %35 = dma.hbm_to_vmem [thread:$0]  %s282_s1, 256, %s30_s30, [#allocation6], %s201_s25, %s201_s25, %s202_s26  }
  0x23   :  { %194 = dma.done.wait [#allocation3], 256  }
  0x24   :  { %195 = vsyncadd [#allocation3], 4294967040 }
  0x25   :  { %196 = dma.done.wait [#allocation6], 256  }
  0x26   :  { %197 = vsyncadd [#allocation6], 4294967040  ;;  %v46_v0 = vld [vmem:[#allocation2] sm:$0xff]  ;;  %v48_v1 = vld [vmem:[#allocation5] sm:$0xff]  ;;  %v60_v6 = vlaneseq  ;;  %s204_s17 = smov [#allocation7]  }
  0x27   :  { %v47_v2 = vld [vmem:[#allocation2 + $0x8] sm:$0xff]  ;;  %v50_v3 = vadd.f32 %v48_v1, %v46_v0  ;;  %v49_v4 = vld [vmem:[#allocation5 + $0x8] sm:$0xff]  ;;  %v117_v25 = vld [vmem:[%s283_s2] ss:$0 sm:$0xff]  ;;  %s104_s18 = sshll.u32 %s204_s17, 4  ;;  %s105_s18 = int_to_ptr.vmem [resolvable:$true] %s104_s18 }
  0x28   :  { %v51_v5 = vadd.f32 %v49_v4, %v47_v2  ;;  %v61_v7 = vand.u32 127, %v60_v6  ;;  %v118_v27 = vld [vmem:[%s284_s3] ss:$0 sm:$0xff]  ;;  %s172_s19 = scalar_lea.vmem %s105_s18, 256  ;;  %p177_p3 = scmp.lt.s32.totalorder %s105_s18, %s105_s18 }
  0x29   :  { %52 = vadd.xlane.f32.xlu0 %v50_v3  ;;  %p173_p2 = scmp.ne.s32.totalorder %s105_s18, %s172_s19  ;;  %p178_p4 = scmp.lt.s32.totalorder %s172_s19, %s172_s19 }
  0x2a   :  { %vm62_vm0 = vcmp.lt.s32.totalorder %v61_v7, 32 }
  0x2b   :  { %p179_p5 = por %p178_p4, %p177_p3 }
  0x2d   :  { %54 = vadd.xlane.f32.xlu0 %v51_v5  ;;  %p180_p6 = pnand %p179_p5, %p173_p2 }
  0xb6   :  { %v53_v8 = vpop.xlane.xlu0 %52 }
  0xb7   :  { %v56_v9 = vmul.f32 0.03125, %v53_v8 }
  0xb9   :  { %v58_v10 = vsub.f32 %v50_v3, %v56_v9 }
  0xba   :  { %v55_v11 = vpop.xlane.xlu0 %54 }
  0xbb   :  { %v57_v12 = vmul.f32 0.03125, %v55_v11  ;;  %v63_v13 = vsel %vm62_vm0, %v58_v10, 0.0 }
  0xbc   :  { %v65_v14 = vmul.f32 %v63_v13, %v63_v13 }
  0xbd   :  { %v59_v15 = vsub.f32 %v51_v5, %v57_v12 }
  0xbe   :  { %67 = vadd.xlane.f32.xlu1 %v65_v14 }
  0xbf   :  { %v64_v16 = vsel %vm62_vm0, %v59_v15, 0.0 }
  0xc0   :  { %v66_v17 = vmul.f32 %v64_v16, %v64_v16 }
  0xc2   :  { %69 = vadd.xlane.f32.xlu1 %v66_v17 }
 0x14b   :  { %v68_v18 = vpop.xlane.xlu1 %67 }
 0x14c   :  { %v71_v19 = vmul.f32 0.03125, %v68_v18 }
 0x14e   :  { %v73_v20 = vadd.f32 1e-05, %v71_v19 }
 0x14f   :  { %v70_v21 = vpop.xlane.xlu1 %69 }
 0x150   :  { %124 = vrsqrt.f32 %v73_v20  ;;  %v72_v22 = vmul.f32 0.03125, %v70_v21 }
 0x152   :  { %v74_v23 = vadd.f32 1e-05, %v72_v22 }
 0x154   :  { %126 = vrsqrt.f32 %v74_v23 }
 0x15a   :  { %v125_v24 = vpop.eup %124 }
 0x15b   :  { %v77_v26 = vmul.f32 %v125_v24, %v58_v10 }
 0x15d   :  { %v86_v28 = vmul.f32 %v117_v25, %v77_v26 }
 0x15e   :  { %v127_v29 = vpop.eup %126 }
 0x15f   :  { %v78_v30 = vmul.f32 %v127_v29, %v59_v15  ;;  %v95_v31 = vadd.f32 %v118_v27, %v86_v28 }
 0x161   :  { %v87_v32 = vmul.f32 %v117_v25, %v78_v30  ;;  %97 = vst [vmem:[#allocation7] sm:$0xff] %v95_v31 }
 0x163   :  { %v96_v33 = vadd.f32 %v118_v27, %v87_v32 }
 0x165   :  { %98 = vst [vmem:[#allocation7 + $0x8] sm:$0xff] %v96_v33 }
 0x166   :  { %183 = shalt.err (!%p180_p6)
}
 0x167   :  { %s184_s20 = scalar_lea.hbm %s285_s4, 256 }
 0x168   :  { %p185_p7 = scmp.ne.s32.totalorder %s285_s4, %s184_s20  ;;  %p188_p8 = scmp.lt.u32.totalorder %s184_s20, %s285_s4 }
 0x16a   :  { %p190_p9 = pnand %p188_p8, %p185_p7 }
 0x16c   :  { %193 = shalt.err (!%p190_p9)
}
 0x16d   :  { %110 = dma.vmem_to_hbm [thread:$0]  %s105_s18, 256, %s285_s4, [#allocation4], %s201_s25, %s201_s25, %s202_s26  }
 0x16e   :  { %198 = dma.done.wait [#allocation4], 256  }
 0x16f   :  { %199 = vsyncadd [#allocation4], 4294967040 }
 0x170   :  { %114 = vsyncpa [#allocation3], 1 }
 0x171   :  { %115 = vsyncpa [#allocation6], 1 }
 0x172   :  { %116 = vsyncpa [#allocation4], 1 }

</bundles_post_ra>
